<compile_context>
chip_gen: v5e
topology: v5e:2x2
jax: 0.10.0
libtpu: 0.0.40
codegen_flags: <defaults>
</compile_context>

<pallas_src>
import functools
import math

import jax
import jax.numpy as jnp
from jax.experimental import pallas as pl
from jax.experimental.pallas import tpu as pltpu


# ----------------------------- main-path kernels -----------------------------

def _ln_body(x_ref, w_ref, b_ref, o_ref, *, eps):
    # x_ref: (tile_rows, D) tile; w_ref/b_ref: (1, D) f32, w holds (1 + weight).
    x = x_ref[...]
    d = x.shape[-1]
    inv_d = 1.0 / float(d)

    # Row sum in f32 without first materializing a full f32 copy of the tile.
    mean = jnp.sum(x, axis=-1, keepdims=True, dtype=jnp.float32) * inv_d
    centered = x.astype(jnp.float32) - mean          # single full-tile f32 temp
    var = jnp.sum(centered * centered, axis=-1, keepdims=True) * inv_d
    scale = jax.lax.rsqrt(var + eps) * w_ref[...]

    y = centered * scale
    if b_ref is not None:
        y = y + b_ref[...]
    o_ref[...] = y.astype(o_ref.dtype)


def _ln_kernel_bias(x_ref, w_ref, b_ref, o_ref, *, eps):
    _ln_body(x_ref, w_ref, b_ref, o_ref, eps=eps)


def _ln_kernel_nobias(x_ref, w_ref, o_ref, *, eps):
    _ln_body(x_ref, w_ref, None, o_ref, eps=eps)


# --------------------------- wide-D fallback kernels --------------------------
# Two-pass, lane-tiled path for D so large that even an 8-row (8, D) tile does
# not fit the VMEM budget: pass 1 accumulates sum / sum-of-squares across D
# tiles and emits mean / rstd, pass 2 normalizes elementwise.

def _ln_stats_kernel(x_ref, mean_ref, rstd_ref, sum_sc, sq_sc, *, eps, d_true,
                     tile_d):
    k = pl.program_id(1)

    @pl.when(k == 0)
    def _():
        sum_sc[...] = jnp.zeros_like(sum_sc)
        sq_sc[...] = jnp.zeros_like(sq_sc)

    x = x_ref[...].astype(jnp.float32)
    if d_true % tile_d != 0:
        # Last D tile is partial: zero the out-of-range lanes before summing.
        lane = jax.lax.broadcasted_iota(jnp.int32, x.shape, x.ndim - 1)
        x = jnp.where(lane + k * tile_d < d_true, x, 0.0)
    sum_sc[...] += jnp.sum(x, axis=-1, keepdims=True)
    sq_sc[...] += jnp.sum(x * x, axis=-1, keepdims=True)

    @pl.when(k == pl.num_programs(1) - 1)
    def _():
        inv_d = 1.0 / float(d_true)
        mean = sum_sc[...] * inv_d
        # One-pass variance; clamp tiny negative values from cancellation.
        var = jnp.maximum(sq_sc[...] * inv_d - mean * mean, 0.0)
        mean_ref[...] = mean
        rstd_ref[...] = jax.lax.rsqrt(var + eps)


def _ln_apply_kernel_bias(x_ref, mean_ref, rstd_ref, w_ref, b_ref, o_ref):
    y = (x_ref[...].astype(jnp.float32) - mean_ref[...]) * rstd_ref[...]
    o_ref[...] = (y * w_ref[...] + b_ref[...]).astype(o_ref.dtype)


def _ln_apply_kernel_nobias(x_ref, mean_ref, rstd_ref, w_ref, o_ref):
    y = (x_ref[...].astype(jnp.float32) - mean_ref[...]) * rstd_ref[...]
    o_ref[...] = (y * w_ref[...]).astype(o_ref.dtype)


# ----------------------------- tiling helpers --------------------------------

def _round_up(n, m):
    return ((n + m - 1) // m) * m


def _vmem_budgets():
    """(pipeline_budget_bytes, vmem_limit_bytes_or_None) per chip generation."""
    kind = ""
    try:
        dev = jax.devices()[0]
        kind = (getattr(dev, "device_kind", "") or "").lower()
    except Exception:
        kind = ""
    if ("v7" in kind) or ("tpu7" in kind) or ("7x" in kind):
        # 64 MiB physical VMEM per TensorCore.
        return 28 << 20, 48 << 20
    if ("v6" in kind) or ("v5" in kind):
        # 128 MiB physical VMEM; streaming kernels plateau well before huge
        # tiles, so keep the limit moderate and leave compiler-scratch headroom.
        return 48 << 20, 80 << 20
    # Unknown / host-only compilation: conservative, keep the compiler default.
    return 16 << 20, None


def _per_row_bytes(D, dtype_bytes):
    # Double-buffered native in + out blocks, plus ~3 full-tile f32 temporaries
    # (f32 centered copy + transients) that live inside the kernel.
    return D * (4 * dtype_bytes + 3 * 4)


def _pick_tile_rows(R, D, dtype_bytes, budget):
    if R <= 8:
        return max(R, 1)
    tile = (budget // _per_row_bytes(D, dtype_bytes)) // 8 * 8
    tile = int(max(8, min(tile, 512)))           # 512-row cap: past roofline
    tile = min(tile, _round_up(R, 8))            # never exceed the data
    # Keep >=4 grid steps (>=2 per TensorCore on v7x) for DMA overlap, unless
    # that would shrink tiles below ~128 rows.
    steps_cap = max(128, _round_up(pl.cdiv(R, 4), 8))
    tile = min(tile, steps_cap)
    return tile


# ------------------------------ wide-D wrapper --------------------------------

def _layer_norm_wide_d(x2, w2, b2, eps, R, D, dtype_bytes, budget, vmem_limit,
                       tile_d=None):
    tile_rows = 8 if R >= 8 else R
    if tile_d is None:
        per_lane = tile_rows * (4 * dtype_bytes + 12)
        tile_d = (budget // per_lane) // 128 * 128
        tile_d = max(128, int(tile_d))
    if tile_d >= D:
        tile_d = D                                # full extent, single D step
    grid = (pl.cdiv(R, tile_rows), pl.cdiv(D, tile_d))

    # Pass 1: per-row mean / rstd.
    mean, rstd = pl.pallas_call(
        functools.partial(_ln_stats_kernel, eps=float(eps), d_true=D,
                          tile_d=tile_d),
        out_shape=(jax.ShapeDtypeStruct((R, 1), jnp.float32),
                   jax.ShapeDtypeStruct((R, 1), jnp.float32)),
        grid_spec=pltpu.PrefetchScalarGridSpec(
            num_scalar_prefetch=0,
            grid=grid,
            in_specs=[pl.BlockSpec((tile_rows, tile_d), lambda i, k: (i, k))],
            out_specs=[pl.BlockSpec((tile_rows, 1), lambda i, k: (i, 0)),
                       pl.BlockSpec((tile_rows, 1), lambda i, k: (i, 0))],
            scratch_shapes=[pltpu.VMEM((tile_rows, 1), jnp.float32),
                            pltpu.VMEM((tile_rows, 1), jnp.float32)]),
        compiler_params=pltpu.CompilerParams(
            dimension_semantics=("parallel", "arbitrary"),
            vmem_limit_bytes=vmem_limit),
    )(x2)

    # Pass 2: elementwise normalize + affine.
    in_specs = [
        pl.BlockSpec((tile_rows, tile_d), lambda i, k: (i, k)),
        pl.BlockSpec((tile_rows, 1), lambda i, k: (i, 0)),
        pl.BlockSpec((tile_rows, 1), lambda i, k: (i, 0)),
        pl.BlockSpec((1, tile_d), lambda i, k: (0, k)),
    ]
    args = [x2, mean, rstd, w2]
    if b2 is not None:
        in_specs.append(pl.BlockSpec((1, tile_d), lambda i, k: (0, k)))
        args.append(b2)
        kernel = _ln_apply_kernel_bias
    else:
        kernel = _ln_apply_kernel_nobias

    return pl.pallas_call(
        kernel,
        out_shape=jax.ShapeDtypeStruct((R, D), x2.dtype),
        grid_spec=pltpu.PrefetchScalarGridSpec(
            num_scalar_prefetch=0,
            grid=grid,
            in_specs=in_specs,
            out_specs=pl.BlockSpec((tile_rows, tile_d), lambda i, k: (i, k))),
        compiler_params=pltpu.CompilerParams(
            dimension_semantics=("parallel", "parallel"),
            vmem_limit_bytes=vmem_limit),
    )(*args)


# --------------------------------- wrapper ------------------------------------

def layer_norm(x, weight, bias=None, eps=1e-5, *, _force_wide_d=False):
    """LayerNorm over the last axis of x.

    x:      (..., D)
    weight: (D,)   -- applied as (1 + weight), matching the PyTorch module
    bias:   (D,) or None (use_bias=False)
    """
    orig_shape = x.shape
    D = orig_shape[-1]
    R = math.prod(orig_shape[:-1]) if len(orig_shape) > 1 else 1
    x2 = x.reshape(R, D)
    use_bias = bias is not None

    # Hoist the affine prep: (1 + weight) and bias once, in f32, shape (1, D).
    w2 = (1.0 + weight.astype(jnp.float32)).reshape(1, D)
    b2 = bias.astype(jnp.float32).reshape(1, D) if use_bias else None

    pipeline_budget, vmem_limit = _vmem_budgets()
    dtype_bytes = jnp.dtype(x.dtype).itemsize

    # Wide-D fallback when even an 8-row tile does not fit the pipeline budget.
    wide_needed = _per_row_bytes(D, dtype_bytes) * min(R, 8) > pipeline_budget
    if _force_wide_d or wide_needed:
        forced_td = None
        if (not isinstance(_force_wide_d, bool) and
                isinstance(_force_wide_d, int) and _force_wide_d > 0):
            forced_td = int(_force_wide_d)
        out = _layer_norm_wide_d(x2, w2, b2, float(eps), R, D, dtype_bytes,
                                 pipeline_budget, vmem_limit, tile_d=forced_td)
        return out.reshape(orig_shape)

    tile_rows = _pick_tile_rows(R, D, dtype_bytes, pipeline_budget)
    grid = (pl.cdiv(R, tile_rows),)

    in_specs = [
        pl.BlockSpec((tile_rows, D), lambda i: (i, 0)),
        pl.BlockSpec((1, D), lambda i: (0, 0)),
    ]
    args = [x2, w2]
    if use_bias:
        in_specs.append(pl.BlockSpec((1, D), lambda i: (0, 0)))
        args.append(b2)
        kernel = functools.partial(_ln_kernel_bias, eps=float(eps))
    else:
        kernel = functools.partial(_ln_kernel_nobias, eps=float(eps))

    out = pl.pallas_call(
        kernel,
        out_shape=jax.ShapeDtypeStruct((R, D), x.dtype),
        grid_spec=pltpu.PrefetchScalarGridSpec(
            num_scalar_prefetch=0,
            grid=grid,
            in_specs=in_specs,
            out_specs=pl.BlockSpec((tile_rows, D), lambda i: (i, 0)),
        ),
        compiler_params=pltpu.CompilerParams(
            dimension_semantics=("parallel",),
            vmem_limit_bytes=vmem_limit,
        ),
    )(*args)
    return out.reshape(orig_shape)


# -------------------------------- reference -----------------------------------

def _reference(x, weight, bias, eps):
    mean = jnp.mean(x, axis=-1, keepdims=True)
    var = jnp.mean((x - mean) ** 2, axis=-1, keepdims=True)
    y = (x - mean) / jnp.sqrt(var + eps)
    y = y * (1.0 + weight)
    if bias is not None:
        y = y + bias
    return y


if __name__ == "__main__":
    key = jax.random.PRNGKey(0)
    kx, kw, kb, kx2, kx3 = jax.random.split(key, 5)

    # --- shape implied by the module: (batch=2, seq=8, hidden=32), f32 --------
    batch, seq, hidden = 2, 8, 32
    x = jax.random.normal(kx, (batch, seq, hidden), dtype=jnp.float32)
    weight = 0.1 * jax.random.normal(kw, (hidden,), dtype=jnp.float32)
    bias = 0.1 * jax.random.normal(kb, (hidden,), dtype=jnp.float32)

    out = jax.block_until_ready(layer_norm(x, weight, bias, eps=1e-5))
    ref = _reference(x, weight, bias, 1e-5)
    assert out.shape == x.shape
    assert jnp.allclose(out, ref, atol=1e-5, rtol=1e-5), "mismatch (bias)"

    # --- use_bias=False path (no bias DMA / add) -------------------------------
    out_nb = jax.block_until_ready(layer_norm(x, weight, None, eps=1e-5))
    ref_nb = _reference(x, weight, None, 1e-5)
    assert jnp.allclose(out_nb, ref_nb, atol=1e-5, rtol=1e-5), "mismatch (no bias)"

    # --- lane-dense D (multiple of 128), bf16 ----------------------------------
    hb = 256
    xb = jax.random.normal(kx2, (4, 16, hb), dtype=jnp.float32).astype(jnp.bfloat16)
    wb = 0.1 * jax.random.normal(kw, (hb,), dtype=jnp.float32)
    bb = 0.1 * jax.random.normal(kb, (hb,), dtype=jnp.float32)
    out_b = jax.block_until_ready(layer_norm(xb, wb, bb, eps=1e-5))
    ref_b = _reference(xb.astype(jnp.float32), wb, bb, 1e-5)
    assert jnp.allclose(out_b.astype(jnp.float32), ref_b, atol=5e-2, rtol=5e-2), \
        "mismatch (bf16)"

    # --- forced wide-D fallback (two-pass lane-tiled path, masked tail) --------
    dw = 160
    xw = jax.random.normal(kx3, (16, dw), dtype=jnp.float32)
    ww = 0.1 * jax.random.normal(kw, (dw,), dtype=jnp.float32)
    bw = 0.1 * jax.random.normal(kb, (dw,), dtype=jnp.float32)
    out_w = jax.block_until_ready(layer_norm(xw, ww, bw, eps=1e-5, _force_wide_d=128))
    ref_w = _reference(xw, ww, bw, 1e-5)
    assert jnp.allclose(out_w, ref_w, atol=1e-4, rtol=1e-4), "mismatch (wide-D)"

    print("KERNEL_OK")
</pallas_src>

<mosaic_0001>
module attributes {stable_mosaic.version = 11 : i64} {
  func.func @_ln_kernel_bias(%arg0: i32, %arg1: memref<16x32xf32, #tpu.memory_space<vmem>>, %arg2: memref<1x32xf32, #tpu.memory_space<vmem>>, %arg3: memref<1x32xf32, #tpu.memory_space<vmem>>, %arg4: memref<16x32xf32, #tpu.memory_space<vmem>>) attributes {dimension_semantics = [#tpu.dimension_semantics<parallel>], iteration_bounds = array<i64: 1>, scalar_prefetch = 0 : i64, scratch_operands = 0 : i64, tpu.core_type = #tpu.core_type<tc>, window_params = [{transform_indices = @transform_0, window_bounds = array<i64: 16, 32>}, {pipeline_mode = #tpu.pipeline_mode<synchronous>, transform_indices = @transform_1, window_bounds = array<i64: 1, 32>}, {pipeline_mode = #tpu.pipeline_mode<synchronous>, transform_indices = @transform_2, window_bounds = array<i64: 1, 32>}, {transform_indices = @transform_3, window_bounds = array<i64: 16, 32>}]} {
    %c0 = arith.constant 0 : index
    %c0_0 = arith.constant 0 : index
    %0 = vector.load %arg1[%c0, %c0_0] : memref<16x32xf32, #tpu.memory_space<vmem>>, vector<16x32xf32>
    %cst = arith.constant dense<0.000000e+00> : vector<16xf32>
    %1 = vector.multi_reduction <add>, %0, %cst [1] : vector<16x32xf32> to vector<16xf32>
    %2 = vector.shape_cast %1 : vector<16xf32> to vector<16x1xf32>
    %cst_1 = arith.constant 3.125000e-02 : f32
    %3 = vector.broadcast %cst_1 : f32 to vector<16x1xf32>
    %4 = arith.mulf %2, %3 : vector<16x1xf32>
    %5 = vector.broadcast %4 : vector<16x1xf32> to vector<16x32xf32>
    %6 = arith.subf %0, %5 : vector<16x32xf32>
    %7 = arith.mulf %6, %6 : vector<16x32xf32>
    %cst_2 = arith.constant dense<0.000000e+00> : vector<16xf32>
    %8 = vector.multi_reduction <add>, %7, %cst_2 [1] : vector<16x32xf32> to vector<16xf32>
    %9 = vector.shape_cast %8 : vector<16xf32> to vector<16x1xf32>
    %cst_3 = arith.constant 3.125000e-02 : f32
    %10 = vector.broadcast %cst_3 : f32 to vector<16x1xf32>
    %11 = arith.mulf %9, %10 : vector<16x1xf32>
    %cst_4 = arith.constant 9.99999974E-6 : f32
    %12 = vector.broadcast %cst_4 : f32 to vector<16x1xf32>
    %13 = arith.addf %11, %12 : vector<16x1xf32>
    %14 = math.rsqrt %13 : vector<16x1xf32>
    %c0_5 = arith.constant 0 : index
    %c0_6 = arith.constant 0 : index
    %15 = vector.load %arg2[%c0_5, %c0_6] : memref<1x32xf32, #tpu.memory_space<vmem>>, vector<1x32xf32>
    %16 = vector.broadcast %14 : vector<16x1xf32> to vector<16x32xf32>
    %17 = vector.broadcast %15 : vector<1x32xf32> to vector<16x32xf32>
    %18 = arith.mulf %16, %17 : vector<16x32xf32>
    %19 = arith.mulf %6, %18 : vector<16x32xf32>
    %c0_7 = arith.constant 0 : index
    %c0_8 = arith.constant 0 : index
    %20 = vector.load %arg3[%c0_7, %c0_8] : memref<1x32xf32, #tpu.memory_space<vmem>>, vector<1x32xf32>
    %21 = vector.broadcast %20 : vector<1x32xf32> to vector<16x32xf32>
    %22 = arith.addf %19, %21 : vector<16x32xf32>
    %c0_9 = arith.constant 0 : index
    %c0_10 = arith.constant 0 : index
    %23 = vector.load %arg4[%c0_9, %c0_10] : memref<16x32xf32, #tpu.memory_space<vmem>>, vector<16x32xf32>
    tpu.vector_store %arg4[%c0_9, %c0_10], %22 {strides = array<i32>} : memref<16x32xf32, #tpu.memory_space<vmem>>, vector<16x32xf32>,
    return
  }
  func.func @transform_0(%arg0: i32) -> (i32, i32) {
    %c0_i32 = arith.constant 0 : i32
    %c0_i32_0 = arith.constant 0 : i32
    return %arg0, %c0_i32 : i32, i32
  }
  func.func @transform_1(%arg0: i32) -> (i32, i32) {
    %c0_i32 = arith.constant 0 : i32
    %c0_i32_0 = arith.constant 0 : i32
    %c0_i32_1 = arith.constant 0 : i32
    return %c0_i32, %c0_i32_0 : i32, i32
  }
  func.func @transform_2(%arg0: i32) -> (i32, i32) {
    %c0_i32 = arith.constant 0 : i32
    %c0_i32_0 = arith.constant 0 : i32
    %c0_i32_1 = arith.constant 0 : i32
    return %c0_i32, %c0_i32_0 : i32, i32
  }
  func.func @transform_3(%arg0: i32) -> (i32, i32) {
    %c0_i32 = arith.constant 0 : i32
    %c0_i32_0 = arith.constant 0 : i32
    return %arg0, %c0_i32 : i32, i32
  }
}

</mosaic_0001>

<bundles_post_ra>
// kernel: tpu_custom_call.1
= control target key start
LH: loop header
LB: loop body
LE: loop exit
PB: predicated region body
PF: predicated region fallthrough
CT: control target
= control target key end

     0   :  { %8 = vsyncpa [#allocation3], 0  ;;  %s264_s0 = inlined_call_operand.hbm [shape: f32[16,32], index: 0, kind: input, shape index: {}]   ;;  %s265_s1 = inlined_call_operand.hbm [shape: f32[1,32], index: 1, kind: input, shape index: {}]   ;;  %s266_s2 = inlined_call_operand.vmem [shape: f32[1,32], index: 2, kind: input, shape index: {}]   ;;  %s267_s3 = inlined_call_operand.hbm [shape: f32[16,32], index: 3, kind: output, shape index: {}]  }
   0x1   :  { %9 = vsyncpa [#allocation6], 0 }
   0x2   :  { %10 = vsyncpa [#allocation4], 0  ;;  %s15_s14 = sshll.u32 %s264_s0, 4  ;;  %s215_s15 = smov [#allocation2]   ;;  %s16_s14 = int_to_ptr.hbm [resolvable:$true] %s15_s14 }
   0x3   :  { %s17_s16 = sshll.u32 %s215_s15, 4  ;;  %s29_s19 = sshll.u32 %s265_s1, 4  ;;  %s18_s16 = int_to_ptr.vmem [resolvable:$true] %s17_s16  ;;  %s30_s19 = int_to_ptr.hbm [resolvable:$true] %s29_s19 }
   0x4   :  { %s216_s20 = smov 128   ;;  %s217_s21 = smov 8  }
   0x5   :  { %23 = dma.hbm_to_vmem [thread:$0]  %s16_s14, 256, %s18_s16, [#allocation3], %s216_s20, %s216_s20, %s217_s21  }
   0x6   :  { %s218_s22 = smov [#allocation5]  }
   0x7   :  { %s31_s23 = sshll.u32 %s218_s22, 4  ;;  %s32_s23 = int_to_ptr.vmem [resolvable:$true] %s31_s23 }
   0x8   :  { %34 = dma.hbm_to_vmem [thread:$0]  %s30_s19, 16, %s32_s23, [#allocation6]  }
   0x9   :  { %209 = dma.done.wait [#allocation3], 256  }
   0xa   :  { %210 = vsyncadd [#allocation3], 4294967040 }
   0xb   :  { %211 = dma.done.wait [#allocation6], 16  }
   0xc   :  { %212 = vsyncadd [#allocation6], 4294967280  ;;  %vm47_vm0 = vcmask 261120   ;;  %v45_v0 = vld [vmem:[#allocation2] sm:$0xff]  ;;  %v46_v2 = vld [vmem:[#allocation2 + $0x8] sm:$0xff]  ;;  %s219_s24 = smov [#allocation7]  }
   0xd   :  { %v48_v1 = vsel %vm47_vm0, %v45_v0, 0.0  ;;  %v51_v3 = vsel %vm47_vm0, %v46_v2, 0.0  ;;  %v131_v26 = vld [vmem:[#allocation5] ss:$0 sm:$0xff]  ;;  %v132_v32 = vld [vmem:[%s266_s2] ss:$0 sm:$0xff] }
   0xe   :  { %49 = vadd.xlane.f32.xlu0 %v48_v1  ;;  %s110_s25 = sshll.u32 %s219_s24, 4  ;;  %s112_s28 = sshll.u32 %s267_s3, 4  ;;  %s111_s25 = int_to_ptr.vmem [resolvable:$true] %s110_s25  ;;  %s113_s28 = int_to_ptr.hbm [resolvable:$true] %s112_s28 }
  0x16   :  { %52 = vadd.xlane.f32.xlu0 %v51_v3 }
  0x81   :  { %v50_v4 = vpop.xlane.xlu0 %49 }
  0x82   :  { %v54_v5 = vmul.f32 0.03125, %v50_v4 }
  0x84   :  { %v56_v6 = vsub.f32 %v45_v0, %v54_v5 }
  0x86   :  { %v58_v7 = vmul.f32 %v56_v6, %v56_v6 }
  0x88   :  { %v60_v8 = vsel %vm47_vm0, %v58_v7, 0.0 }
  0x89   :  { %61 = vadd.xlane.f32.xlu1 %v60_v8  ;;  %v53_v9 = vpop.xlane.xlu0 %52 }
  0x8a   :  { %v55_v10 = vmul.f32 0.03125, %v53_v9 }
  0x8c   :  { %v57_v11 = vsub.f32 %v46_v2, %v55_v10 }
  0x8e   :  { %v59_v12 = vmul.f32 %v57_v11, %v57_v11 }
  0x90   :  { %v63_v13 = vsel %vm47_vm0, %v59_v12, 0.0 }
  0x91   :  { %64 = vadd.xlane.f32.xlu1 %v63_v13 }
  0xfc   :  { %v62_v14 = vpop.xlane.xlu1 %61 }
  0xfd   :  { %v66_v15 = vmul.f32 0.03125, %v62_v14 }
  0xff   :  { %v68_v16 = vadd.f32 1e-05, %v66_v15 }
 0x101   :  { %133 = vrsqrt.f32 %v68_v16  ;;  %vm76_vm2 = vweird.f32 %v68_v16 }
 0x104   :  { %v65_v17 = vpop.xlane.xlu1 %64 }
 0x105   :  { %v67_v18 = vmul.f32 0.03125, %v65_v17 }
 0x107   :  { %v134_v19 = vpop.eup %133  ;;  %v69_v20 = vadd.f32 1e-05, %v67_v18 }
 0x108   :  { %v71_v21 = vmul.f32 %v134_v19, %v68_v16  ;;  %vm77_vm1 = vweird.f32 %v134_v19 }
 0x109   :  { %135 = vrsqrt.f32 %v69_v20  ;;  %vm78_vm3 = vmor %vm76_vm2, %vm77_vm1  ;;  %vm86_vm5 = vweird.f32 %v69_v20 }
 0x10a   :  { %v72_v22 = vmul.f32 %v134_v19, %v71_v21 }
 0x10c   :  { %v73_v23 = vmul.f32 0.5, %v72_v22 }
 0x10e   :  { %v74_v24 = vsub.f32 1.5, %v73_v23 }
 0x10f   :  { %v136_v25 = vpop.eup %135 }
 0x110   :  { %v75_v27 = vmul.f32 %v134_v19, %v74_v24  ;;  %v81_v28 = vmul.f32 %v136_v25, %v69_v20  ;;  %vm87_vm4 = vweird.f32 %v136_v25 }
 0x111   :  { %vm88_vm6 = vmor %vm86_vm5, %vm87_vm4 }
 0x112   :  { %v79_v29 = vsel %vm78_vm3, %v134_v19, %v75_v27  ;;  %v82_v30 = vmul.f32 %v136_v25, %v81_v28 }
 0x113   :  { %v94_v31 = vmul.f32 %v131_v26, %v79_v29 }
 0x114   :  { %v83_v33 = vmul.f32 0.5, %v82_v30 }
 0x115   :  { %v96_v34 = vmul.f32 %v94_v31, %v56_v6 }
 0x116   :  { %v84_v35 = vsub.f32 1.5, %v83_v33 }
 0x117   :  { %v102_v36 = vadd.f32 %v132_v32, %v96_v34 }
 0x118   :  { %v85_v37 = vmul.f32 %v136_v25, %v84_v35 }
 0x119   :  { %104 = vst.msk [vmem:[#allocation7] sm:$0xff] %vm47_vm0, %v102_v36 }
 0x11a   :  { %v89_v38 = vsel %vm88_vm6, %v136_v25, %v85_v37 }
 0x11b   :  { %v95_v39 = vmul.f32 %v131_v26, %v89_v38 }
 0x11d   :  { %v97_v40 = vmul.f32 %v95_v39, %v57_v11 }
 0x11f   :  { %v103_v41 = vadd.f32 %v132_v32, %v97_v40 }
 0x121   :  { %105 = vst.msk [vmem:[#allocation7 + $0x8] sm:$0xff] %vm47_vm0, %v103_v41 }
 0x122   :  { %118 = dma.vmem_to_hbm [thread:$0]  %s111_s25, 256, %s113_s28, [#allocation4], %s216_s20, %s216_s20, %s217_s21  }
 0x123   :  { %213 = dma.done.wait [#allocation4], 256  }
 0x124   :  { %214 = vsyncadd [#allocation4], 4294967040 }
 0x125   :  { %123 = vsyncpa [#allocation3], 1 }
 0x126   :  { %124 = vsyncpa [#allocation6], 1 }
 0x127   :  { %125 = vsyncpa [#allocation4], 1 }

</bundles_post_ra>
